<compile_context>
chip_gen: v7x
topology: tpu7x:2x2x1
jax: 0.10.0
libtpu: 0.0.40
codegen_flags: <defaults>
</compile_context>

<pallas_src>
import functools
import math

import jax
import jax.numpy as jnp
from jax.experimental import pallas as pl
from jax.experimental.pallas import tpu as pltpu

_LANE = 128
_N_TILE_CAP = 65536                      # lanes; ~2 MiB/operand-tile at C=8 f32
_VMEM_LIMIT = 48 * 1024 * 1024           # explicit scoped-VMEM limit (fits v7x)


def _wattn_kernel(pc_ref, img_ref, w_ref, wattn_ref, score_acc, *, scale, tail_len):
    """Phase A: score[b] = pc[b] @ img[b]^T accumulated over N-tiles; at the
    last tile softmax it and fold in the Linear weight (w_attn = W @ attn).
    Batch 0 is not in this grid (its mask is forced to ones downstream)."""
    nt = pl.program_id(1)
    last = pl.num_programs(1) - 1

    @pl.when(nt == 0)
    def _init():
        score_acc[...] = jnp.zeros_like(score_acc)

    def _accum(pc, img):
        # (C, n_tile) x (C, n_tile) contracted over the lane axis -> (C, C)
        score_acc[...] += jax.lax.dot_general(
            pc, img, (((1,), (1,)), ((), ())),
            preferred_element_type=jnp.float32)

    if tail_len is None:
        # Every tile is full-width (or there is a single full-extent tile).
        _accum(pc_ref[0], img_ref[0])
    else:
        @pl.when(nt != last)
        def _full():
            _accum(pc_ref[0], img_ref[0])

        @pl.when(nt == last)
        def _tail():
            # Ragged trailing tile: the OOB lanes of the VMEM block are
            # unspecified -> zero both operands there before accumulating.
            pc = pc_ref[0]
            img = img_ref[0]
            lane = jax.lax.broadcasted_iota(jnp.int32, pc.shape, 1)
            keep = lane < tail_len
            _accum(jnp.where(keep, pc, jnp.zeros_like(pc)),
                   jnp.where(keep, img, jnp.zeros_like(img)))

    @pl.when(nt == last)
    def _finalize():
        score = score_acc[...] * scale
        score = score - jnp.max(score, axis=-1, keepdims=True)
        e = jnp.exp(score)
        attn = e / jnp.sum(e, axis=-1, keepdims=True)
        # Fold Linear weight into attention: (W @ attn) @ img == W @ (attn @ img)
        wattn_ref[0] = jnp.dot(w_ref[...], attn,
                               preferred_element_type=jnp.float32)


def _mask_kernel(wattn_ref, bias_ref, img_ref, out_ref, *, logit_thres):
    """Phase B: mask_tile = ((W @ attn) @ img_tile + bias) > logit(thres)."""
    bi = pl.program_id(1)

    @pl.when(bi == 0)
    def _ones():
        # mask[0] is forced to all-ones by the module.
        out_ref[...] = jnp.ones_like(out_ref)

    @pl.when(bi != 0)
    def _compute():
        proj = jnp.dot(wattn_ref[0], img_ref[0],
                       preferred_element_type=jnp.float32)
        proj = proj + bias_ref[...]
        # sigmoid(proj) > thres  <=>  proj > logit(thres)
        out_ref[0] = (proj > logit_thres).astype(out_ref.dtype)


def img_modal_fusion(img_voxel, pc_voxel, w, b, *, threshold=0.5,
                     n_tile=None, mask_dtype=None,
                     vmem_budget_bytes=32 * 1024 * 1024):
    """img_voxel, pc_voxel: (B, C, Z, H, W).  w: (C, C), b: (C,) = nn.Linear(C, C).

    Returns the 0/1 fusion mask of shape (B, C, Z, H, W).  mask_dtype defaults
    to the input dtype (0/1 are exact in any dtype; pass int8/bf16 to cut HBM
    writeback).  bf16 pc/img inputs are the cheapest path on all generations.
    """
    assert 0.0 < threshold < 1.0
    assert img_voxel.shape == pc_voxel.shape
    B, C, Z, H, W = pc_voxel.shape
    N = Z * H * W
    if mask_dtype is None:
        mask_dtype = pc_voxel.dtype

    if B == 1:
        # Batch 0 is forced to all-ones; with a single batch there is nothing
        # to compute.
        return jnp.ones((B, C, Z, H, W), mask_dtype)

    scale = 1.0 / math.sqrt(C)                       # ScaledDotProductAttention(dim=C)
    logit_thres = math.log(threshold / (1.0 - threshold))

    # ---- tile sizing: budget the double-buffered streaming footprint -------
    bytes_in = jnp.dtype(pc_voxel.dtype).itemsize
    bytes_out = jnp.dtype(mask_dtype).itemsize
    if n_tile is None:
        per_lane = max(4 * C * bytes_in,             # Phase A: pc + img, 2 buffers each
                       2 * C * (bytes_in + bytes_out))  # Phase B: img + mask, 2 buffers
        n_tile = min(vmem_budget_bytes // per_lane, _N_TILE_CAP)
    n_tile = max(_LANE, (int(n_tile) // _LANE) * _LANE)

    if N <= n_tile:
        n_tile, n_tiles, tail_len = N, 1, None       # single full-extent tile
    else:
        n_tiles = pl.cdiv(N, n_tile)
        rem = N % n_tile
        tail_len = rem if rem else None              # ragged trailing tile length

    pc_flat = pc_voxel.reshape(B, C, N)
    img_flat = img_voxel.reshape(B, C, N)
    w32 = w.astype(jnp.float32)
    b32 = b.reshape(C, 1).astype(jnp.float32)

    # --- Phase A: (B-1, C, C) fused weight*attention (batch 0 excluded) -----
    wattn = pl.pallas_call(
        functools.partial(_wattn_kernel, scale=scale, tail_len=tail_len),
        out_shape=jax.ShapeDtypeStruct((B - 1, C, C), jnp.float32),
        grid_spec=pltpu.PrefetchScalarGridSpec(
            num_scalar_prefetch=0,
            grid=(B - 1, n_tiles),
            in_specs=[
                pl.BlockSpec((1, C, n_tile), lambda bi, ni: (bi + 1, 0, ni)),  # pc
                pl.BlockSpec((1, C, n_tile), lambda bi, ni: (bi + 1, 0, ni)),  # img
                pl.BlockSpec((C, C), lambda bi, ni: (0, 0)),                   # W (resident)
            ],
            out_specs=pl.BlockSpec((1, C, C), lambda bi, ni: (bi, 0, 0)),
            scratch_shapes=[pltpu.VMEM((C, C), jnp.float32)],
        ),
        compiler_params=pltpu.CompilerParams(
            dimension_semantics=("parallel", "arbitrary"),
            vmem_limit_bytes=_VMEM_LIMIT),
    )(pc_flat, img_flat, w32)

    # Hoist the cast so Phase B reads the folded weight in the input dtype.
    wattn = wattn.astype(img_flat.dtype)

    # --- Phase B: threshold mask, tile axis leading for dual-TC balance -----
    # Batch 0's img fetch is aliased onto batch 1's tile (same block index as
    # the next grid step), so it costs no extra HBM traffic.
    mask_flat = pl.pallas_call(
        functools.partial(_mask_kernel, logit_thres=logit_thres),
        out_shape=jax.ShapeDtypeStruct((B, C, N), mask_dtype),
        grid_spec=pltpu.PrefetchScalarGridSpec(
            num_scalar_prefetch=0,
            grid=(n_tiles, B),
            in_specs=[
                pl.BlockSpec((1, C, C),
                             lambda ni, bi: (jnp.maximum(bi, 1) - 1, 0, 0)),   # W @ attn
                pl.BlockSpec((C, 1), lambda ni, bi: (0, 0)),                   # bias
                pl.BlockSpec((1, C, n_tile),
                             lambda ni, bi: (jnp.maximum(bi, 1), 0, ni)),      # img
            ],
            out_specs=pl.BlockSpec((1, C, n_tile), lambda ni, bi: (bi, 0, ni)),
        ),
        compiler_params=pltpu.CompilerParams(
            dimension_semantics=("parallel", "parallel"),
            vmem_limit_bytes=_VMEM_LIMIT),
    )(wattn, b32, img_flat)

    return mask_flat.reshape(B, C, Z, H, W)


def _reference(img_voxel, pc_voxel, w, b, threshold=0.5):
    B, C, Z, H, W = pc_voxel.shape
    N = Z * H * W
    q = pc_voxel.reshape(B, C, N)
    k = v = img_voxel.reshape(B, C, N)
    score = jnp.einsum("bcn,bdn->bcd", q, k) / math.sqrt(C)
    attn = jax.nn.softmax(score, axis=-1)
    ctx = jnp.einsum("bcd,bdn->bcn", attn, v)                        # (B, C, N)
    y = jnp.einsum("bcn,dc->bdn", ctx, w) + b[None, :, None]
    vm = jax.nn.sigmoid(y)
    mask = jnp.where(vm > threshold, 1.0, 0.0)
    mask = mask.at[0].set(1.0)
    margin = y - math.log(threshold / (1.0 - threshold))
    return mask.reshape(B, C, Z, H, W), margin.reshape(B, C, Z, H, W)


if __name__ == "__main__":
    key = jax.random.PRNGKey(0)
    B, C, Z, H, W = 3, 8, 2, 10, 10      # dim == C == 8, N = 200 (not 128-aligned)

    k1, k2, k3, k4 = jax.random.split(key, 4)
    img_voxel = jax.random.normal(k1, (B, C, Z, H, W), dtype=jnp.float32)
    pc_voxel = jax.random.normal(k2, (B, C, Z, H, W), dtype=jnp.float32)
    # nn.Linear(dim, dim): weight (C, C), bias (C,) — deterministic synthetic init.
    w = 0.1 * jax.random.normal(k3, (C, C), dtype=jnp.float32)
    b = 0.1 * jax.random.normal(k4, (C,), dtype=jnp.float32)

    ref, margin = _reference(img_voxel, pc_voxel, w, b, threshold=0.5)
    decisive = jnp.abs(margin) > 1e-4    # ignore elements numerically at the threshold

    # 1) Auto tile: N (=200) fits one full-extent tile -> single-step reduction.
    out_auto = jax.block_until_ready(
        img_modal_fusion(img_voxel, pc_voxel, w, b, threshold=0.5))
    # 2) Forced small tile: exercises multi-tile accumulation, in-kernel
    #    ragged-tail masking, and the partial trailing output block.
    out_tiled = jax.block_until_ready(
        img_modal_fusion(img_voxel, pc_voxel, w, b, threshold=0.5, n_tile=128))

    for out in (out_auto, out_tiled):
        assert out.shape == (B, C, Z, H, W)
        # Binary masks must agree everywhere except (possibly) elements whose
        # pre-sigmoid value sits within float-rounding distance of the threshold.
        assert bool(jnp.all(jnp.where(decisive, out == ref, True))), "mismatch vs reference"
        assert float(jnp.mean((out != ref).astype(jnp.float32))) < 1e-3
    print("KERNEL_OK")
</pallas_src>

<mosaic_0001>
module attributes {stable_mosaic.version = 11 : i64} {
  func.func @_wattn_kernel(%arg0: i32, %arg1: i32, %arg2: memref<1x8x200xf32, #tpu.memory_space<vmem>>, %arg3: memref<1x8x200xf32, #tpu.memory_space<vmem>>, %arg4: memref<8x8xf32, #tpu.memory_space<vmem>>, %arg5: memref<1x8x8xf32, #tpu.memory_space<vmem>>, %arg6: memref<8x8xf32, #tpu.memory_space<vmem>>) attributes {dimension_semantics = [#tpu.dimension_semantics<parallel>, #tpu.dimension_semantics<arbitrary>], iteration_bounds = array<i64: 2, 1>, scalar_prefetch = 0 : i64, scratch_operands = 1 : i64, tpu.core_type = #tpu.core_type<tc>, window_params = [{transform_indices = @transform_0, window_bounds = array<i64: 1, 8, 200>}, {transform_indices = @transform_1, window_bounds = array<i64: 1, 8, 200>}, {pipeline_mode = #tpu.pipeline_mode<synchronous>, transform_indices = @transform_2, window_bounds = array<i64: 8, 8>}, {transform_indices = @transform_3, window_bounds = array<i64: 1, 8, 8>}]} {
    %c0_i32 = arith.constant 0 : i32
    %0 = arith.cmpi eq, %arg1, %c0_i32 : i32
    %1 = arith.extui %0 : i1 to i32
    %c0_i32_0 = arith.constant 0 : i32
    %2 = arith.cmpi ne, %1, %c0_i32_0 : i32
    scf.if %2 {
      %cst_12 = arith.constant 0.000000e+00 : f32
      %14 = vector.broadcast %cst_12 : f32 to vector<8x8xf32>
      %c0_13 = arith.constant 0 : index
      %c0_14 = arith.constant 0 : index
      %15 = vector.load %arg6[%c0_13, %c0_14] : memref<8x8xf32, #tpu.memory_space<vmem>>, vector<8x8xf32>
      tpu.vector_store %arg6[%c0_13, %c0_14], %14 {strides = array<i32>} : memref<8x8xf32, #tpu.memory_space<vmem>>, vector<8x8xf32>,
    } else {
    }
    %c0 = arith.constant 0 : index
    %c0_1 = arith.constant 0 : index
    %c0_2 = arith.constant 0 : index
    %3 = vector.load %arg2[%c0, %c0_1, %c0_2] : memref<1x8x200xf32, #tpu.memory_space<vmem>>, vector<1x8x200xf32>
    %4 = vector.shape_cast %3 : vector<1x8x200xf32> to vector<8x200xf32>
    %c0_3 = arith.constant 0 : index
    %c0_4 = arith.constant 0 : index
    %c0_5 = arith.constant 0 : index
    %5 = vector.load %arg3[%c0_3, %c0_4, %c0_5] : memref<1x8x200xf32, #tpu.memory_space<vmem>>, vector<1x8x200xf32>
    %6 = vector.shape_cast %5 : vector<1x8x200xf32> to vector<8x200xf32>
    %c0_6 = arith.constant 0 : index
    %c0_7 = arith.constant 0 : index
    %7 = vector.load %arg6[%c0_6, %c0_7] : memref<8x8xf32, #tpu.memory_space<vmem>>, vector<8x8xf32>
    %cst = arith.constant dense<0.000000e+00> : vector<8x8xf32>
    %8 = tpu.matmul %4, %6, %cst {dimension_numbers = #tpu.dot_dimension_numbers<[1], [1], [0], [0], [0, 0, 1, 0], [], []>} : vector<8x200xf32>, vector<8x200xf32>, vector<8x8xf32> -> vector<8x8xf32>
    %9 = arith.addf %7, %8 : vector<8x8xf32>
    %c0_8 = arith.constant 0 : index
    %c0_9 = arith.constant 0 : index
    %10 = vector.load %arg6[%c0_8, %c0_9] : memref<8x8xf32, #tpu.memory_space<vmem>>, vector<8x8xf32>
    tpu.vector_store %arg6[%c0_8, %c0_9], %9 {strides = array<i32>} : memref<8x8xf32, #tpu.memory_space<vmem>>, vector<8x8xf32>,
    %c0_i32_10 = arith.constant 0 : i32
    %11 = arith.cmpi eq, %arg1, %c0_i32_10 : i32
    %12 = arith.extui %11 : i1 to i32
    %c0_i32_11 = arith.constant 0 : i32
    %13 = arith.cmpi ne, %12, %c0_i32_11 : i32
    scf.if %13 {
      %c0_12 = arith.constant 0 : index
      %c0_13 = arith.constant 0 : index
      %14 = vector.load %arg6[%c0_12, %c0_13] : memref<8x8xf32, #tpu.memory_space<vmem>>, vector<8x8xf32>
      %cst_14 = arith.constant 0.353553385 : f32
      %15 = vector.broadcast %cst_14 : f32 to vector<8x8xf32>
      %16 = arith.mulf %14, %15 : vector<8x8xf32>
      %cst_15 = arith.constant dense<0xFF800000> : vector<8xf32>
      %17 = vector.multi_reduction <maximumf>, %16, %cst_15 [1] : vector<8x8xf32> to vector<8xf32>
      %18 = vector.shape_cast %17 : vector<8xf32> to vector<8x1xf32>
      %19 = vector.broadcast %18 : vector<8x1xf32> to vector<8x8xf32>
      %20 = arith.subf %16, %19 : vector<8x8xf32>
      %21 = math.exp %20 : vector<8x8xf32>
      %cst_16 = arith.constant dense<0.000000e+00> : vector<8xf32>
      %22 = vector.multi_reduction <add>, %21, %cst_16 [1] : vector<8x8xf32> to vector<8xf32>
      %23 = vector.shape_cast %22 : vector<8xf32> to vector<8x1xf32>
      %24 = vector.broadcast %23 : vector<8x1xf32> to vector<8x8xf32>
      %25 = arith.divf %21, %24 : vector<8x8xf32>
      %c0_17 = arith.constant 0 : index
      %c0_18 = arith.constant 0 : index
      %26 = vector.load %arg4[%c0_17, %c0_18] : memref<8x8xf32, #tpu.memory_space<vmem>>, vector<8x8xf32>
      %cst_19 = arith.constant dense<0.000000e+00> : vector<8x8xf32>
      %27 = tpu.matmul %26, %25, %cst_19 {dimension_numbers = #tpu.dot_dimension_numbers<[1], [0], [0], [1], [0, 0, 1, 1], [], []>} : vector<8x8xf32>, vector<8x8xf32>, vector<8x8xf32> -> vector<8x8xf32>
      %c0_20 = arith.constant 0 : index
      %c0_21 = arith.constant 0 : index
      %c0_22 = arith.constant 0 : index
      %28 = vector.load %arg5[%c0_20, %c0_21, %c0_22] : memref<1x8x8xf32, #tpu.memory_space<vmem>>, vector<1x8x8xf32>
      %29 = vector.shape_cast %28 : vector<1x8x8xf32> to vector<8x8xf32>
      %30 = vector.shape_cast %27 : vector<8x8xf32> to vector<1x8x8xf32>
      tpu.vector_store %arg5[%c0_20, %c0_21, %c0_22], %30 {strides = array<i32>} : memref<1x8x8xf32, #tpu.memory_space<vmem>>, vector<1x8x8xf32>,
    } else {
    }
    return
  }
  func.func @transform_0(%arg0: i32, %arg1: i32) -> (i32, i32, i32) {
    %c1_i32 = arith.constant 1 : i32
    %0 = arith.addi %arg0, %c1_i32 : i32
    %c0_i32 = arith.constant 0 : i32
    %c0_i32_0 = arith.constant 0 : i32
    return %0, %c0_i32, %arg1 : i32, i32, i32
  }
  func.func @transform_1(%arg0: i32, %arg1: i32) -> (i32, i32, i32) {
    %c1_i32 = arith.constant 1 : i32
    %0 = arith.addi %arg0, %c1_i32 : i32
    %c0_i32 = arith.constant 0 : i32
    %c0_i32_0 = arith.constant 0 : i32
    return %0, %c0_i32, %arg1 : i32, i32, i32
  }
  func.func @transform_2(%arg0: i32, %arg1: i32) -> (i32, i32) {
    %c0_i32 = arith.constant 0 : i32
    %c0_i32_0 = arith.constant 0 : i32
    %c0_i32_1 = arith.constant 0 : i32
    return %c0_i32, %c0_i32_0 : i32, i32
  }
  func.func @transform_3(%arg0: i32, %arg1: i32) -> (i32, i32, i32) {
    %c0_i32 = arith.constant 0 : i32
    %c0_i32_0 = arith.constant 0 : i32
    %c0_i32_1 = arith.constant 0 : i32
    return %arg0, %c0_i32, %c0_i32_0 : i32, i32, i32
  }
}

</mosaic_0001>

<bundles_post_ra>
// kernel: tpu_custom_call.1
= control target key start
LH: loop header
LB: loop body
LE: loop exit
PB: predicated region body
PF: predicated region fallthrough
CT: control target
= control target key end

     0   :  { %s1232_s0 = inlined_call_operand.hbm [shape: f32[3,8,200], index: 0, kind: input, shape index: {}]   ;;  %s1233_s1 = inlined_call_operand.hbm [shape: f32[3,8,200], index: 1, kind: input, shape index: {}]   ;;  %s1234_s2 = inlined_call_operand.hbm [shape: f32[8,8], index: 2, kind: input, shape index: {}]   ;;  %s1235_s3 = inlined_call_operand.hbm [shape: f32[2,8,8], index: 3, kind: output, shape index: {}]  }
   0x1   :  { %1243 = sst [smem:[#allocation19_spill]] %s1234_s2 }
   0x2   :  { %8 = vsyncpa [#allocation4], 0 }
   0x3   :  { %10 = vsyncpa [#allocation4 + $0x1], 0 }
   0x4   :  { %11 = vsyncpa [#allocation7], 0 }
   0x5   :  { %13 = vsyncpa [#allocation7 + $0x1], 0 }
   0x6   :  { %14 = vsyncpa [#allocation5], 0 }
   0x7   :  { %16 = vsyncpa [#allocation5 + $0x1], 0  ;;  %s953_s12 = smov 0   ;;  %s955_s13 = smov 0  }
   0x8   :  { %s957_s14 = smov 0   ;;  %s959_s15 = smov 0  }
   0x9   :  { %s961_s16 = smov 0   ;;  %s963_s17 = smov 0  }
   0xa   :  { %s965_s18 = smov 0   ;;  %s967_s19 = smov 0  }
   0xb   :  { %s969_s20 = smov 0  }
   0xc LB: > { %1244 = sst [smem:[#allocation14_spill]] %s913_s17  ;;  %s997_s21 = sadd.s32 4294967295, %s925_s20   ;;  %s925_s20 = sphi %s969_s20, %s22_s20   ;;  %s921_s19 = sphi %s967_s19, %s1269_s19   ;;  %s917_s18 = sphi %s965_s18, %s1268_s18   ;;  %s913_s17 = sphi %s963_s17, %s1267_s17   ;;  %s909_s16 = sphi %s961_s16, %s1274_s16   ;;  %s905_s15 = sphi %s959_s15, %s1273_s15   ;;  %s901_s14 = sphi %s957_s14, %s1272_s14   ;;  %s897_s13 = sphi %s955_s13, %s1271_s13   ;;  %s893_s12 = sphi %s953_s12, %s1270_s12  }
   0xd   : > { %1245 = sst [smem:[#allocation15_spill]] %s921_s19  ;;  %s582_s22 = sadd.s32 4294967294, %s925_s20  }
   0xe   : > { %p58_p0 = scmp.ne.s32.totalorder %s909_s16, %s905_s15  ;;  %p1236_p1 = scmp.eq.s32.totalorder %s997_s21, 0 }
   0xf   : > { %p132_p2 = scmp.ne.s32.totalorder %s901_s14, %s897_s13  ;;  %p133_p3 = scmp.eq.s32.totalorder %s997_s21, 1 }
  0x10   : > { %p1007_p4 = por %p1236_p1, %p58_p0  ;;  %p138_p5 = scmp.ne.s32.totalorder %s897_s13, %s893_s12 }
  0x11   : > { %p1013_p6 = por %p133_p3, %p132_p2  ;;  %p139_p7 = scmp.eq.s32.totalorder %s582_s22, 1 }
  0x12   : > { %s1246_s23 = scalar_select %p1007_p4, 1, 0 }
  0x13   : > { %s1247_s24 = scalar_select %p1013_p6, 1, 0 }
  0x14   : > { %p583_p8 = scmp.ge.s32.totalorder %s925_s20, 1  ;;  %p146_p9 = scmp.lt.s32.totalorder %s925_s20, 3 }
  0x15   : > { %p1019_p10 = por %p139_p7, %p138_p5  ;;  %s927_s27 = smov [#allocation8]  }
  0x16   : > { %p1023_p11 = pnand %p583_p8, %p146_p9  ;;  %s159_s28 = sshll.u32 %s927_s27, 4  ;;  %s160_s28 = int_to_ptr.vmem [resolvable:$true] %s159_s28 }
  0x17   : > { %s1248_s25 = scalar_select %p1019_p10, 1, 0 }
  0x18   : > { %s1249_s26 = scalar_select %p1023_p11, 1, 0 }
  0x19   : > { %p623_p13 = pneg %p1023_p11  ;;  %s34_s30 = sadd.s32 1, %s921_s19 }
  0x1a   : > { %s1251_s2 = sld [smem:[#allocation19_spill]] }
  0x1b   : > { %p1032_p0 = pnand %p623_p13, %p1236_p1 }
  0x1d   : > { %p723_p5 = pneg %p1032_p0 }
  0x20   : > { %s721_s6 = scalar_lea.hbm %s1251_s2, 128 }
  0x21   : > { %p722_p3 = scmp.ne.s32.totalorder %s1251_s2, %s721_s6  ;;  %p728_p9 = scmp.lt.u32.totalorder %s721_s6, %s1251_s2 }
  0x23   : > { %p724_p7 = pnand %p723_p5, %p722_p3 }
  0x25   : > { %p725_p8 = pneg %p724_p7 }
  0x27   : > { %p730_p13 = pnand %p728_p9, %p725_p8 }
  0x29   : > { %733 = shalt.err (!%p730_p13)
}
  0x2a   : > { %s734_s11 = scalar_lea.vmem %s160_s28, 128  ;;  %p742_p10 = scmp.lt.s32.totalorder %s160_s28, %s160_s28 }
  0x2b   : > { %p735_p12 = scmp.ne.s32.totalorder %s160_s28, %s734_s11  ;;  %p743_p6 = scmp.lt.s32.totalorder %s734_s11, %s734_s11 }
  0x2d   : > { %p737_p1 = pnand %p735_p12, %p723_p5  ;;  %p744_p4 = por %p743_p6, %p742_p10 }
  0x2f   : > { %p738_p2 = pneg %p737_p1 }
  0x31   : > { %p745_p11 = pnand %p744_p4, %p738_p2 }
  0x33   : > { %748 = shalt.err (!%p745_p11)
}
  0x34   : > { %626 = dma.hbm_to_vmem [thread:$0]  (!%p1032_p0), %s1251_s2, 128, %s160_s28, [#allocation7]  }
  0x35   : > { %p1252_p1 = scmp.ge.s32.totalorder %s34_s30, 2  ;;  %s45_s29 = sadd.s32 1, %s913_s17 }
  0x36   : > { %p52_p4 = scmp.ne.s32.totalorder %s913_s17, %s909_s16  ;;  %p53_p6 = scmp.eq.s32.totalorder %s925_s20, 0 }
  0x37   : > { %s1054_s27 = scalar_select %p1252_p1, 0, %s34_s30  }
  0x38   : > { %p1063_p11 = por %p53_p6, %p52_p4  ;;  %s122_s28 = sadd.s32 1, %s901_s14 }
  0x39   : > { %1253 = sst [smem:[#allocation16_spill]] %s1054_s27  ;;  %s39_s4 = sadd.s32 1, %s1054_s27 }
  0x3a   : > { %s40_s5 = ssub.s32 %s34_s30, %s39_s4  ;;  %s119_s6 = ssub.s32 %s921_s19, %s1054_s27 }
  0x3b   : > { %p43_p10 = scmp.eq.s32.totalorder %s40_s5, 0  ;;  %p120_p12 = scmp.eq.s32.totalorder %s119_s6, 0 }
  0x3c   : > { %p639_p0 = scmp.lt.s32.totalorder %s925_s20, 2  ;;  %s170_s10 = sand.u32 1, %s913_s17  }
  0x3d   : > { %s1069_s8 = scalar_select %p43_p10, %s913_s17, %s45_s29  }
  0x3e   : > { %s1072_s9 = scalar_select %p120_p12, %s901_s14, %s122_s28  }
  0x3f   : > { %1255 = sst [smem:[#allocation17_spill]] %s1069_s8  ;;  %s1076_s11 = sshll.u32 %s170_s10, 4 }
  0x40   : > { %1256 = sst [smem:[#allocation18_spill]] %s1072_s9  ;;  %s604_s30 = sshll.u32 %s921_s19, 8 }
  0x41   : > { %s497_s4 = scalar_lea.hbm %s1232_s0, %s604_s30  ;;  %s174_s5 = scalar_lea.vmem [#allocation3], %s1076_s11 }
  0x42   : > { %s185_s2 = sshll.u32 %s174_s5, 4  ;;  %s1083_s27 = scalar_lea.hbm %s497_s4, 256  ;;  %s1085_s2 = int_to_ptr.vmem [resolvable:$true] %s185_s2 }
  0x43   : > { %p1089_p2 = pnand %p639_p0, %p1063_p11  ;;  %s1096_s15 = scalar_lea.hbm %s1233_s1, %s604_s30 }
  0x44   : > { %s192_s22 = sand.u32 1, %s925_s20   ;;  %s171_s5 = scalar_lea.sflag [#allocation4], %s170_s10 }
  0x45   : > { %s779_s19 = scalar_lea.hbm %s497_s4, 512  ;;  %p751_p5 = pneg %p1089_p2 }
  0x46   : > { %p750_p3 = scmp.ne.s32.totalorder %s1083_s27, %s779_s19  ;;  %s754_s17 = scalar_lea.hbm %s1232_s0, 768 }
  0x47   : > { %p755_p9 = scmp.lt.u32.totalorder %s1083_s27, %s1232_s0  ;;  %p756_p13 = scmp.lt.u32.totalorder %s754_s17, %s779_s19 }
  0x48   : > { %p752_p7 = pnand %p751_p5, %p750_p3  ;;  %p758_p4 = scmp.lt.u32.totalorder %s779_s19, %s1083_s27 }
  0x49   : > { %p757_p1 = por %p756_p13, %p755_p9 }
  0x4a   : > { %p753_p8 = pneg %p752_p7 }
  0x4b   : > { %p759_p6 = por %p758_p4, %p757_p1 }
  0x4d   : > { %p760_p10 = pnand %p759_p6, %p753_p8 }
  0x4f   : > { %763 = shalt.err (!%p760_p10)
}
  0x50   : > { %s764_s10 = scalar_lea.vmem %s1085_s2, 256  ;;  %s928_s8 = smov [#allocation3]  }
  0x51   : > { %p765_p11 = scmp.ne.s32.totalorder %s1085_s2, %s764_s10  ;;  %s769_s30 = sshll.u32 %s928_s8, 4  ;;  %s770_s30 = int_to_ptr.vmem [resolvable:$false] %s769_s30 }
  0x52   : > { %s771_s9 = scalar_lea.vmem %s770_s30, 512  ;;  %p772_p3 = scmp.lt.s32.totalorder %s1085_s2, %s770_s30 }
  0x53   : > { %p767_p12 = pnand %p765_p11, %p751_p5  ;;  %p773_p7 = scmp.lt.s32.totalorder %s771_s9, %s764_s10 }
  0x55   : > { %p768_p0 = pneg %p767_p12  ;;  %p774_p9 = por %p773_p7, %p772_p3 }
  0x57   : > { %p775_p13 = pnand %p774_p9, %p768_p0 }
  0x59   : > { %778 = shalt.err (!%p775_p13)
}
  0x5a   : > { %630 = dma.hbm_to_vmem [thread:$0]  (!%p1089_p2), %s1083_s27, 256, %s1085_s2, %s171_s5  }
  0x5b   : > { %s1124_s17 = scalar_lea.hbm %s1096_s15, 256  ;;  %s196_s19 = scalar_lea.vmem [#allocation6], %s1076_s11 }
  0x5c   : > { %s207_s4 = sshll.u32 %s196_s19, 4  ;;  %s193_s28 = scalar_lea.sflag [#allocation7], %s192_s22  ;;  %s208_s4 = int_to_ptr.vmem [resolvable:$true] %s207_s4 }
  0x5d   : > { %s810_s7 = scalar_lea.hbm %s1096_s15, 512  ;;  %s785_s2 = scalar_lea.hbm %s1233_s1, 768 }
  0x5e   : > { %p781_p8 = scmp.ne.s32.totalorder %s1124_s17, %s810_s7  ;;  %p786_p6 = scmp.lt.u32.totalorder %s1124_s17, %s1233_s1 }
  0x5f   : > { %p787_p10 = scmp.lt.u32.totalorder %s785_s2, %s810_s7  ;;  %p789_p12 = scmp.lt.u32.totalorder %s810_s7, %s1124_s17 }
  0x60   : > { %p783_p1 = pnand %p781_p8, %p751_p5 }
  0x61   : > { %p788_p11 = por %p787_p10, %p786_p6 }
  0x62   : > { %p784_p4 = pneg %p783_p1 }
  0x63   : > { %p790_p0 = por %p789_p12, %p788_p11 }
  0x65   : > { %p791_p3 = pnand %p790_p0, %p784_p4 }
  0x67   : > { %794 = shalt.err (!%p791_p3)
}
  0x68   : > { %s795_s11 = scalar_lea.vmem %s208_s4, 256  ;;  %s929_s15 = smov [#allocation6]  }
  0x69   : > { %p796_p7 = scmp.ne.s32.totalorder %s208_s4, %s795_s11  ;;  %s800_s22 = sshll.u32 %s929_s15, 4  ;;  %s801_s22 = int_to_ptr.vmem [resolvable:$false] %s800_s22 }
  0x6a   : > { %s802_s8 = scalar_lea.vmem %s801_s22, 512  ;;  %p803_p8 = scmp.lt.s32.totalorder %s208_s4, %s801_s22 }
  0x6b   : > { %p798_p9 = pnand %p796_p7, %p751_p5  ;;  %p804_p1 = scmp.lt.s32.totalorder %s802_s8, %s795_s11 }
  0x6d   : > { %p799_p13 = pneg %p798_p9  ;;  %p805_p6 = por %p804_p1, %p803_p8 }
  0x6f   : > { %p806_p10 = pnand %p805_p6, %p799_p13 }
  0x71   : > { %809 = shalt.err (!%p806_p10)
}
  0x72   : > { %633 = dma.hbm_to_vmem [thread:$0]  (!%p1089_p2), %s1124_s17, 256, %s208_s4, %s193_s28  }
  0x73   : > { %p1258_p4 = scmp.ne.s32.totalorder %s1249_s26, 0 }
  0x74   : > { %s218_s30 = sand.u32 (!%p1258_p4), 1, %s909_s16   ;;  %p1259_p5 = scmp.ne.s32.totalorder (!%p1258_p4), %s1246_s23, 0 }
  0x75   : > { %216 = sbr.rel (%p1258_p4) target bundleno = 901 (0x385), region = 32  ;;  %s593_s9 = sshll.u32 (!%p1258_p4), %s218_s30, 4 }
  0x76   : > { %s219_s19 = scalar_lea.sflag (!%p1258_p4), [#allocation4], %s218_s30  ;;  %s222_s7 = scalar_lea.vmem (!%p1258_p4), [#allocation3], %s593_s9 }
  0x7c   : > { %876 = dma.done.wait (%p1259_p5), %s219_s19, 256  }
  0x7d   : > { %878 = vsyncadd (%p1259_p5), %s219_s19, 4294967040  ;;  %s227_s6 = sand.u32 1, %s997_s21   ;;  %s231_s10 = scalar_lea.vmem [#allocation6], %s593_s9 }
  0x7e   : > { %s228_s29 = scalar_lea.sflag [#allocation7], %s227_s6 }
  0x7f   : > { %880 = dma.done.wait (%p1259_p5), %s228_s29, 256  }
  0x80   : > { %882 = vsyncadd (%p1259_p5), %s228_s29, 4294967040  ;;  %p1260_p2 = scmp.eq.s32.totalorder %s997_s21, 0 }
  0x82   : > { %884 = dma.done.wait (%p1260_p2), [#allocation7], 128   ;;  %p1261_p11 = pmov %p1260_p2 }
  0x83   : > { %vm271_vm0 = vcmask 64512   ;;  %v930_v0 = vmov 0.0   ;;  %vm278_vm1 = vcmask 588800   ;;  %v276_v1 = vld [vmem:[%s231_s10 + $0x8] sm:$0xff]  ;;  %v275_v2 = vld [vmem:[%s231_s10] sm:$0xff]  ;;  %vm931_vm2 = vmmov 0  }
  0x84   : > { %886 = vsyncadd (%p1261_p11), [#allocation7], 4294967168  ;;  %272 = vst.msk [vmem:[#allocation2] sm:$0xff] %vm271_vm0, %v930_v0  ;;  %608 = vmatprep.subr.mxu1 %v930_v0  ;;  %v274_v3 = vld [vmem:[%s222_s7 + $0x8] sm:$0xff]  ;;  %597 = vmatprep.subr.msk.mxu0 %vm278_vm1, %v276_v1  ;;  %v273_v4 = vld [vmem:[%s222_s7] sm:$0xff]  ;;  %s260_s21 = sand.u32 1, %s897_s13  }
  0x85   : > { %598 = vmatprep.mubr.msk.f32.mxu0 %vm278_vm1, %v274_v3  ;;  %286 = vmatpush1.xpose.msra.mxu0 %v275_v2  ;;  %v374_v20 = vld [vmem:[#allocation8] sm:$0xff]  ;;  %s596_s23 = sshll.u32 %s260_s21, 3  ;;  %s601_s26 = sshll.u32 %s917_s18, 7 }
  0x86   : > { %610 = vmatprep.mubr.msk.f32.mxu1 %vm931_vm2, %v930_v0  ;;  %s262_s17 = scalar_lea.vmem [#allocation9], %s596_s23  ;;  %s1174_s27 = scalar_lea.hbm %s1235_s3, %s601_s26 }
  0x87   : > { %s463_s4 = sshll.u32 %s262_s17, 4  ;;  %s450_s5 = scalar_lea.sflag [#allocation5], %s260_s21  ;;  %s1176_s4 = int_to_ptr.vmem [resolvable:$true] %s463_s4 }
  0x88   : > { %350 = vmatmul.mubr.f32.vlgmr.msra.gmra.mrb[0].mxu0 %v273_v4  ;;  %s811_s11 = scalar_lea.vmem %s1176_s4, 128  ;;  %p1262_p0 = scmp.ne.s32.totalorder %s1247_s24, 0 }
  0x89   : > { %p812_p12 = scmp.ne.s32.totalorder %s1176_s4, %s811_s11  ;;  %s932_s18 = smov [#allocation9]  }
  0x8a   : > { %s815_s15 = sshll.u32 %s932_s18, 4  ;;  %s816_s15 = int_to_ptr.vmem [resolvable:$false] %s815_s15 }
  0x8b   : > { %v277_v5 = vld [vmem:[#allocation2] sm:$0xff]  ;;  %p813_p3 = pnand %p812_p12, %p1262_p0  ;;  %s817_s22 = scalar_lea.vmem %s816_s15, 256 }
  0x8c   : > { %p818_p9 = scmp.lt.s32.totalorder %s1176_s4, %s816_s15  ;;  %p819_p13 = scmp.lt.s32.totalorder %s817_s22, %s811_s11 }
  0x8d   : > { %p814_p7 = pneg %p813_p3 }
  0x8e   : > { %p820_p8 = por %p819_p13, %p818_p9 }
  0x90   : > { %p821_p1 = pnand %p820_p8, %p814_p7 }
 0x15b   : > { %v351_v6 = vpop.f32.mrb[0].mxu0 }
 0x15c   : > { %v355_v7 = vadd.f32 %v351_v6, %v277_v5  ;;  %v353_v8 = vpop.f32.mrb[1].mxu0 }
 0x15e   : > { %357 = vst.msk [vmem:[#allocation2] sm:$0xff] %vm271_vm0, %v355_v7 }
 0x165   : > { %v361_v9 = vld [vmem:[#allocation2] sm:$0xff] }
 0x166   : > { %v362_v10 = vmul.f32 0.35355338, %v361_v9 }
 0x168   : > { %v363_v11 = vsel %vm271_vm0, %v362_v10, -inf }
 0x169   : > { %364 = vmax.xlane.f32.xlu0 %v363_v11 }
 0x1f6   : > { %v365_v12 = vpop.xlane.xlu0 %364 }
 0x1f7   : > { %v366_v13 = vsub.f32 %v362_v10, %v365_v12 }
 0x1f9   : > { %v367_v14 = vmul.f32 1.442695, %v366_v13 }
 0x1fb   : > { %717 = vpow2.f32 %v367_v14 }
 0x205   : > { %v718_v15 = vpop.eup %717 }
 0x206   : > { %v369_v16 = vsel %vm271_vm0, %v718_v15, 0.0 }
 0x207   : > { %370 = vadd.xlane.f32.xlu0 %v369_v16 }
 0x294   : > { %v371_v17 = vpop.xlane.xlu0 %370 }
 0x295   : > { %719 = vrcp.f32 %v371_v17 }
 0x29f   : > { %v720_v18 = vpop.eup %719 }
 0x2a0   : > { %v373_v19 = vmul.f32 %v720_v18, %v718_v15 }
 0x2a2   : > { %609 = vmatpush3.msra.mxu1 %v373_v19 }
 0x2a3   : > { %611 = vmatmul.mubr.msk.f32.vlgmr.msra.gmra.mrb[0].mxu1 %vm271_vm0, %v374_v20 }
 0x376   : > { %v444_v21 = vpop.f32.mrb[0].mxu1 }
 0x377   : > { %448 = vst.msk [vmem:[%s262_s17] sm:$0xff] %vm271_vm0, %v444_v21  ;;  %v612_v22 = vpop.f32.mrb[1].mxu1 }
 0x378   : > { %824 = shalt.err (!%p821_p1)
}
 0x379   : > { %s825_s8 = scalar_lea.hbm %s1174_s27, 128  ;;  %s829_s19 = scalar_lea.hbm %s1235_s3, 256 }
 0x37a   : > { %p826_p6 = scmp.ne.s32.totalorder %s1174_s27, %s825_s8  ;;  %p830_p5 = scmp.lt.u32.totalorder %s1174_s27, %s1235_s3 }
 0x37b   : > { %p831_p2 = scmp.lt.u32.totalorder %s829_s19, %s825_s8  ;;  %p833_p12 = scmp.lt.u32.totalorder %s825_s8, %s1174_s27 }
 0x37c   : > { %p827_p10 = pnand %p826_p6, %p1262_p0 }
 0x37d   : > { %p832_p11 = por %p831_p2, %p830_p5 }
 0x37e   : > { %p828_p4 = pneg %p827_p10 }
 0x37f   : > { %p834_p3 = por %p833_p12, %p832_p11 }
 0x381   : > { %p835_p7 = pnand %p834_p3, %p828_p4 }
 0x383   : > { %838 = shalt.err (!%p835_p7)
}
 0x384   : > { %621 = dma.vmem_to_hbm [thread:$0]  (%p1262_p0), %s1176_s4, 128, %s1174_s27, %s450_s5  }
 0x385 PF: > { %s475_s29 = sand.u32 1, %s893_s12   ;;  %p1263_p9 = scmp.ne.s32.totalorder %s1248_s25, 0 }
 0x386   : > { %p1264_p13 = scmp.ge.s32.totalorder %s925_s20, 2  ;;  %s476_s10 = scalar_lea.sflag [#allocation5], %s475_s29 }
 0x388   : > { %p635_p8 = pnand %p1264_p13, %p1263_p9 }
 0x38a   : > { %888 = dma.done.wait (!%p635_p8), %s476_s10, 128  }
 0x38b   : > { %890 = vsyncadd (!%p635_p8), %s476_s10, 4294967168  ;;  %s22_s20 = sadd.s32 1, %s925_s20   ;;  %s1265_s24 = sld [smem:[#allocation18_spill]] }
 0x38c   : > { %p19_p1 = scmp.ge.s32.totalorder %s22_s20, 4   ;;  %s1266_s21 = sld [smem:[#allocation14_spill]] }
 0x38d   : > { %s1267_s17 = sld [smem:[#allocation17_spill]]  ;;  %s1268_s18 = sld [smem:[#allocation15_spill]] }
 0x38e   : > { %s1269_s19 = sld [smem:[#allocation16_spill]]  ;;  %s1270_s12 = smov %s897_s13 }
 0x38f   : > { %s1271_s13 = smov %s901_s14  ;;  %s1273_s15 = smov %s909_s16 }
 0x390   :  { %21 = sbr.rel (!%p19_p1) target bundleno = 12 (0xc), region = 102 }
 0x391   : > { %s1272_s14 = smov %s1265_s24 }
 0x392   : > { %s1274_s16 = smov %s1266_s21 }
 0x397   :  { %481 = vsyncpa [#allocation4], 1 }
 0x398   :  { %483 = vsyncpa [#allocation4 + $0x1], 1 }
 0x399   :  { %484 = vsyncpa [#allocation7], 1 }
 0x39a   :  { %486 = vsyncpa [#allocation7 + $0x1], 1 }
 0x39b   :  { %487 = vsyncpa [#allocation5], 1 }
 0x39c   :  { %489 = vsyncpa [#allocation5 + $0x1], 1 }

</bundles_post_ra>
